<compile_context>
chip_gen: v7x
topology: tpu7x:2x2x1
jax: 0.10.0
libtpu: 0.0.40
codegen_flags: <defaults>
</compile_context>

<pallas_src>
import functools
import math

import jax
import jax.numpy as jnp
from jax.experimental import pallas as pl
from jax.experimental.pallas import tpu as pltpu


def gated_conv_kernel(x_ref, w_ref, b_ref, o_ref, *, pad):
    # x_ref: (1, H, TW, C)     unpadded input tile (H leading -> free tap shift)
    # w_ref: (KH, C, 2C)       conv taps, transposed for right-matmul
    # b_ref: (1, 2C)           conv bias (f32)
    # o_ref: (1, Hout, TW, C)  gated output tile
    _, H, TW, C = x_ref.shape
    KH = w_ref.shape[0]
    twoC = w_ref.shape[2]
    Hout = o_ref.shape[1]
    Cout = twoC // 2

    x = x_ref[0]                                    # (H, TW, C)
    if pad:                                         # in-VMEM halo, no HBM jnp.pad
        z = jnp.zeros((pad, TW, C), x.dtype)
        x = jnp.concatenate([z, x, z], axis=0)      # (H + 2*pad, TW, C)

    # Static unroll over the (small) conv taps: each tap is a leading-axis
    # offset + contiguous view -> one (Hout*TW, C) @ (C, 2C) MXU matmul
    # accumulated in f32.
    acc = jnp.zeros((Hout * TW, twoC), jnp.float32)
    for kh in range(KH):
        xs = x[kh:kh + Hout].reshape(Hout * TW, C)
        acc = acc + jnp.dot(xs, w_ref[kh], preferred_element_type=jnp.float32)

    # Bias fused into the gating epilogue (no full-size bias broadcast up front).
    bias = b_ref[0].astype(jnp.float32)             # (2C,)
    out = acc[:, :Cout] + bias[:Cout]
    gate = acc[:, Cout:] + bias[Cout:]
    res = out * jax.nn.sigmoid(gate)                # f32 epilogue (v5e-safe)
    o_ref[0] = res.reshape(Hout, TW, Cout).astype(o_ref.dtype)


def _choose_tile_w(W, bytes_per_w_column, budget_bytes=2 * 1024 * 1024):
    """Largest divisor of W that is a multiple of 8 (or W itself) and fits budget."""
    candidates = [d for d in range(W, 0, -1)
                  if W % d == 0 and (d % 8 == 0 or d == W)]
    for t in candidates:
        if t * bytes_per_w_column <= budget_bytes:
            return t
    return candidates[-1]


def gated_conv(x_nchw, weight, bias, *, width=3, nopad=False, compute_dtype=None):
    """x_nchw: (B, C, H, W); weight: (2C, C, width, 1) (PyTorch OIHW); bias: (2C,)."""
    B, C, H, W = x_nchw.shape
    pad = (width // 2) * (1 - int(nopad))
    Hout = H + 2 * pad - width + 1
    compute_dtype = compute_dtype or x_nchw.dtype

    # dropout == identity at inference time.
    # NHWC with H leading the spatial dims; halo handled in-kernel (no jnp.pad).
    x = jnp.transpose(x_nchw, (0, 2, 3, 1)).astype(compute_dtype)        # (B, H, W, C)

    # (2C, C, width, 1) -> (width, C, 2C): y[..., oc] = sum_ic x[..., ic]*wk[kh, ic, oc]
    wk = jnp.transpose(weight[:, :, :, 0], (2, 1, 0)).astype(compute_dtype)
    b2 = bias.reshape(1, 2 * C).astype(jnp.float32)

    itemsize = jnp.dtype(compute_dtype).itemsize
    tile_w = _choose_tile_w(W, H * C * itemsize)     # keep double-buffered tiles small
    num_w = W // tile_w

    out = pl.pallas_call(
        functools.partial(gated_conv_kernel, pad=pad),
        out_shape=jax.ShapeDtypeStruct((B, Hout, W, C), x_nchw.dtype),
        grid=(B, num_w),
        in_specs=[
            pl.BlockSpec((1, H, tile_w, C), lambda b, w: (b, 0, w, 0)),
            pl.BlockSpec((width, C, 2 * C), lambda b, w: (0, 0, 0)),
            pl.BlockSpec((1, 2 * C), lambda b, w: (0, 0)),
        ],
        out_specs=pl.BlockSpec((1, Hout, tile_w, C), lambda b, w: (b, 0, w, 0)),
        compiler_params=pltpu.CompilerParams(
            dimension_semantics=("parallel", "parallel"),   # batch + W tiles
            vmem_limit_bytes=48 * 1024 * 1024,              # explicit, v7x-safe
        ),
    )(x, wk, b2)

    return jnp.transpose(out, (0, 3, 1, 2))                              # back to NCHW


def init_params(key, input_size, width=3, dropout=0.2):
    """Deterministic xavier-uniform init matching GatedConv.__init__ shapes."""
    C = input_size
    out_ch = 2 * C
    k_w, k_b = jax.random.split(key)
    # xavier_uniform_ with gain = sqrt(4 * (1 - dropout))
    gain = math.sqrt(4.0 * (1.0 - dropout))
    fan_in = C * width * 1
    fan_out = out_ch * width * 1
    bound = gain * math.sqrt(6.0 / (fan_in + fan_out))
    weight = jax.random.uniform(k_w, (out_ch, C, width, 1), jnp.float32, -bound, bound)
    # PyTorch Conv2d default bias init: U(-1/sqrt(fan_in), 1/sqrt(fan_in))
    b_bound = 1.0 / math.sqrt(fan_in)
    bias = jax.random.uniform(k_b, (out_ch,), jnp.float32, -b_bound, b_bound)
    return weight, bias


def reference_gated_conv(x_nchw, weight, bias, *, width=3, nopad=False):
    C = x_nchw.shape[1]
    pad = (width // 2) * (1 - int(nopad))
    y = jax.lax.conv_general_dilated(
        x_nchw, weight, window_strides=(1, 1),
        padding=((pad, pad), (0, 0)),
        dimension_numbers=("NCHW", "OIHW", "NCHW"),
    ) + bias.reshape(1, -1, 1, 1)
    out, gate = y[:, :C], y[:, C:]
    return out * jax.nn.sigmoid(gate)


if __name__ == "__main__":
    B, C, H, W = 2, 4, 16, 16
    width = 3

    key = jax.random.PRNGKey(0)
    k_x, k_p = jax.random.split(key)
    x = jax.random.normal(k_x, (B, C, H, W), jnp.float32)
    weight, bias = init_params(k_p, C, width=width, dropout=0.2)

    # f32, "same" padding
    y = jax.block_until_ready(gated_conv(x, weight, bias, width=width, nopad=False))
    y_ref = reference_gated_conv(x, weight, bias, width=width, nopad=False)
    assert y.shape == (B, C, H, W)
    assert jnp.allclose(y, y_ref, atol=1e-5, rtol=1e-5), "f32 same-pad mismatch"

    # f32, nopad
    y_np = jax.block_until_ready(gated_conv(x, weight, bias, width=width, nopad=True))
    y_np_ref = reference_gated_conv(x, weight, bias, width=width, nopad=True)
    assert y_np.shape == (B, C, H - width + 1, W)
    assert jnp.allclose(y_np, y_np_ref, atol=1e-5, rtol=1e-5), "f32 nopad mismatch"

    # bf16 operands (f32 accumulation + f32 gating), compared against an f32
    # reference fed with bf16-rounded inputs (relaxed tolerance).
    y_bf = jax.block_until_ready(
        gated_conv(x, weight, bias, width=width, nopad=False,
                   compute_dtype=jnp.bfloat16))
    x_r = x.astype(jnp.bfloat16).astype(jnp.float32)
    w_r = weight.astype(jnp.bfloat16).astype(jnp.float32)
    y_bf_ref = reference_gated_conv(x_r, w_r, bias, width=width, nopad=False)
    assert jnp.allclose(y_bf, y_bf_ref, atol=5e-3, rtol=5e-3), "bf16 mismatch"

    print("KERNEL_OK")
</pallas_src>

<mosaic_0001>
module attributes {stable_mosaic.version = 11 : i64} {
  func.func @gated_conv_kernel(%arg0: i32, %arg1: i32, %arg2: memref<1x16x16x4xf32, #tpu.memory_space<vmem>>, %arg3: memref<3x4x8xf32, #tpu.memory_space<vmem>>, %arg4: memref<1x8xf32, #tpu.memory_space<vmem>>, %arg5: memref<1x16x16x4xf32, #tpu.memory_space<vmem>>) attributes {dimension_semantics = [#tpu.dimension_semantics<parallel>, #tpu.dimension_semantics<parallel>], iteration_bounds = array<i64: 2, 1>, scalar_prefetch = 0 : i64, scratch_operands = 0 : i64, tpu.core_type = #tpu.core_type<tc>, window_params = [{transform_indices = @transform_0, window_bounds = array<i64: 1, 16, 16, 4>}, {pipeline_mode = #tpu.pipeline_mode<synchronous>, transform_indices = @transform_1, window_bounds = array<i64: 3, 4, 8>}, {pipeline_mode = #tpu.pipeline_mode<synchronous>, transform_indices = @transform_2, window_bounds = array<i64: 1, 8>}, {transform_indices = @transform_3, window_bounds = array<i64: 1, 16, 16, 4>}]} {
    %c0 = arith.constant 0 : index
    %c0_0 = arith.constant 0 : index
    %c0_1 = arith.constant 0 : index
    %c0_2 = arith.constant 0 : index
    %0 = vector.load %arg2[%c0, %c0_0, %c0_1, %c0_2] : memref<1x16x16x4xf32, #tpu.memory_space<vmem>>, vector<1x16x16x4xf32>
    %1 = vector.shape_cast %0 : vector<1x16x16x4xf32> to vector<16x16x4xf32>
    %cst = arith.constant 0.000000e+00 : f32
    %2 = vector.broadcast %cst : f32 to vector<1x16x4xf32>
    %3 = tpu.concatenate %2, %1, %2 in 0 : vector<1x16x4xf32>, vector<16x16x4xf32>, vector<1x16x4xf32> -> vector<18x16x4xf32>
    %cst_3 = arith.constant 0.000000e+00 : f32
    %4 = vector.broadcast %cst_3 : f32 to vector<256x8xf32>
    %5 = vector.extract_strided_slice %3 {offsets = [0, 0, 0], sizes = [16, 16, 4], strides = [1, 1, 1]} : vector<18x16x4xf32> to vector<16x16x4xf32>
    %6 = vector.shape_cast %5 : vector<16x16x4xf32> to vector<256x4xf32>
    %c0_4 = arith.constant 0 : index
    %c0_5 = arith.constant 0 : index
    %c0_6 = arith.constant 0 : index
    %7 = vector.load %arg3[%c0_4, %c0_5, %c0_6] : memref<3x4x8xf32, #tpu.memory_space<vmem>>, vector<1x4x8xf32>
    %8 = vector.shape_cast %7 : vector<1x4x8xf32> to vector<4x8xf32>
    %cst_7 = arith.constant dense<0.000000e+00> : vector<256x8xf32>
    %9 = tpu.matmul %6, %8, %cst_7 {dimension_numbers = #tpu.dot_dimension_numbers<[1], [0], [0], [1], [0, 0, 1, 1], [], []>} : vector<256x4xf32>, vector<4x8xf32>, vector<256x8xf32> -> vector<256x8xf32>
    %10 = arith.addf %4, %9 : vector<256x8xf32>
    %11 = vector.extract_strided_slice %3 {offsets = [1, 0, 0], sizes = [16, 16, 4], strides = [1, 1, 1]} : vector<18x16x4xf32> to vector<16x16x4xf32>
    %12 = vector.shape_cast %11 : vector<16x16x4xf32> to vector<256x4xf32>
    %c1 = arith.constant 1 : index
    %c0_8 = arith.constant 0 : index
    %c0_9 = arith.constant 0 : index
    %13 = vector.load %arg3[%c1, %c0_8, %c0_9] : memref<3x4x8xf32, #tpu.memory_space<vmem>>, vector<1x4x8xf32>
    %14 = vector.shape_cast %13 : vector<1x4x8xf32> to vector<4x8xf32>
    %cst_10 = arith.constant dense<0.000000e+00> : vector<256x8xf32>
    %15 = tpu.matmul %12, %14, %cst_10 {dimension_numbers = #tpu.dot_dimension_numbers<[1], [0], [0], [1], [0, 0, 1, 1], [], []>} : vector<256x4xf32>, vector<4x8xf32>, vector<256x8xf32> -> vector<256x8xf32>
    %16 = arith.addf %10, %15 : vector<256x8xf32>
    %17 = vector.extract_strided_slice %3 {offsets = [2, 0, 0], sizes = [16, 16, 4], strides = [1, 1, 1]} : vector<18x16x4xf32> to vector<16x16x4xf32>
    %18 = vector.shape_cast %17 : vector<16x16x4xf32> to vector<256x4xf32>
    %c2 = arith.constant 2 : index
    %c0_11 = arith.constant 0 : index
    %c0_12 = arith.constant 0 : index
    %19 = vector.load %arg3[%c2, %c0_11, %c0_12] : memref<3x4x8xf32, #tpu.memory_space<vmem>>, vector<1x4x8xf32>
    %20 = vector.shape_cast %19 : vector<1x4x8xf32> to vector<4x8xf32>
    %cst_13 = arith.constant dense<0.000000e+00> : vector<256x8xf32>
    %21 = tpu.matmul %18, %20, %cst_13 {dimension_numbers = #tpu.dot_dimension_numbers<[1], [0], [0], [1], [0, 0, 1, 1], [], []>} : vector<256x4xf32>, vector<4x8xf32>, vector<256x8xf32> -> vector<256x8xf32>
    %22 = arith.addf %16, %21 : vector<256x8xf32>
    %c0_14 = arith.constant 0 : index
    %c0_15 = arith.constant 0 : index
    %23 = vector.load %arg4[%c0_14, %c0_15] : memref<1x8xf32, #tpu.memory_space<vmem>>, vector<1x8xf32>
    %24 = vector.shape_cast %23 : vector<1x8xf32> to vector<8xf32>
    %25 = vector.extract_strided_slice %22 {offsets = [0, 0], sizes = [256, 4], strides = [1, 1]} : vector<256x8xf32> to vector<256x4xf32>
    %26 = vector.extract_strided_slice %24 {offsets = [0], sizes = [4], strides = [1]} : vector<8xf32> to vector<4xf32>
    %27 = vector.shape_cast %26 : vector<4xf32> to vector<1x4xf32>
    %28 = vector.broadcast %27 : vector<1x4xf32> to vector<256x4xf32>
    %29 = arith.addf %25, %28 : vector<256x4xf32>
    %30 = vector.extract_strided_slice %22 {offsets = [0, 4], sizes = [256, 4], strides = [1, 1]} : vector<256x8xf32> to vector<256x4xf32>
    %31 = vector.extract_strided_slice %24 {offsets = [4], sizes = [4], strides = [1]} : vector<8xf32> to vector<4xf32>
    %32 = vector.shape_cast %31 : vector<4xf32> to vector<1x4xf32>
    %33 = vector.broadcast %32 : vector<1x4xf32> to vector<256x4xf32>
    %34 = arith.addf %30, %33 : vector<256x4xf32>
    %35 = arith.negf %34 : vector<256x4xf32>
    %36 = math.exp %35 : vector<256x4xf32>
    %cst_16 = arith.constant 1.000000e+00 : f32
    %37 = vector.broadcast %cst_16 : f32 to vector<256x4xf32>
    %38 = arith.addf %37, %36 : vector<256x4xf32>
    %39 = arith.divf %37, %38 : vector<256x4xf32>
    %40 = arith.mulf %29, %39 : vector<256x4xf32>
    %41 = vector.shape_cast %40 : vector<256x4xf32> to vector<16x16x4xf32>
    %c0_17 = arith.constant 0 : index
    %c0_18 = arith.constant 0 : index
    %c0_19 = arith.constant 0 : index
    %c0_20 = arith.constant 0 : index
    %42 = vector.load %arg5[%c0_17, %c0_18, %c0_19, %c0_20] : memref<1x16x16x4xf32, #tpu.memory_space<vmem>>, vector<1x16x16x4xf32>
    %43 = vector.shape_cast %42 : vector<1x16x16x4xf32> to vector<16x16x4xf32>
    %44 = vector.shape_cast %41 : vector<16x16x4xf32> to vector<1x16x16x4xf32>
    tpu.vector_store %arg5[%c0_17, %c0_18, %c0_19, %c0_20], %44 {strides = array<i32>} : memref<1x16x16x4xf32, #tpu.memory_space<vmem>>, vector<1x16x16x4xf32>,
    return
  }
  func.func @transform_0(%arg0: i32, %arg1: i32) -> (i32, i32, i32, i32) {
    %c0_i32 = arith.constant 0 : i32
    %c0_i32_0 = arith.constant 0 : i32
    %c0_i32_1 = arith.constant 0 : i32
    return %arg0, %c0_i32, %arg1, %c0_i32_0 : i32, i32, i32, i32
  }
  func.func @transform_1(%arg0: i32, %arg1: i32) -> (i32, i32, i32) {
    %c0_i32 = arith.constant 0 : i32
    %c0_i32_0 = arith.constant 0 : i32
    %c0_i32_1 = arith.constant 0 : i32
    %c0_i32_2 = arith.constant 0 : i32
    return %c0_i32, %c0_i32_0, %c0_i32_1 : i32, i32, i32
  }
  func.func @transform_2(%arg0: i32, %arg1: i32) -> (i32, i32) {
    %c0_i32 = arith.constant 0 : i32
    %c0_i32_0 = arith.constant 0 : i32
    %c0_i32_1 = arith.constant 0 : i32
    return %c0_i32, %c0_i32_0 : i32, i32
  }
  func.func @transform_3(%arg0: i32, %arg1: i32) -> (i32, i32, i32, i32) {
    %c0_i32 = arith.constant 0 : i32
    %c0_i32_0 = arith.constant 0 : i32
    %c0_i32_1 = arith.constant 0 : i32
    return %arg0, %c0_i32, %arg1, %c0_i32_0 : i32, i32, i32, i32
  }
}

</mosaic_0001>

<bundles_post_ra>
// kernel: tpu_custom_call.1
= control target key start
LH: loop header
LB: loop body
LE: loop exit
PB: predicated region body
PF: predicated region fallthrough
CT: control target
= control target key end

     0   :  { %s2232_s12 = smov 0   ;;  %s2234_s13 = smov 0   ;;  %s2697_s0 = inlined_call_operand.vmem [shape: f32[2,16,16,4], index: 0, kind: input, shape index: {}]   ;;  %s2698_s1 = inlined_call_operand.vmem [shape: f32[3,4,8], index: 1, kind: input, shape index: {}]   ;;  %s2699_s2 = inlined_call_operand.vmem [shape: f32[1,8], index: 2, kind: input, shape index: {}]   ;;  %s2700_s3 = inlined_call_operand.vmem [shape: f32[2,16,16,4], index: 3, kind: output, shape index: {}]  }
   0x1   :  { %s2236_s14 = smov 0  }
   0x2 LB: > { %s25_s15 = sadd.s32 1, %s2204_s13  ;;  %p1578_p0 = scmp.ge.s32.totalorder %s2208_s14, 1  ;;  %s2208_s14 = sphi %s2236_s14, %s13_s14   ;;  %s2204_s13 = sphi %s2234_s13, %s2702_s13   ;;  %s2200_s12 = sphi %s2232_s12, %s2701_s12  }
   0x3   : > { %p27_p1 = scmp.ge.s32.totalorder %s25_s15, 2  ;;  %p158_p2 = scmp.lt.s32.totalorder %s2208_s14, 3 }
   0x5   : > { %s2704_s15 = smov (%p27_p1, %s25_s15), 0  ;;  %p159_p3 = pnand %p1578_p0, %p158_p2 }
   0x6   : > { %v242_v0 = vld [vmem:[%s2698_s1] sm:$0xf] (!%p159_p3)  ;;  %vm342_vm0 = vcmask (!%p159_p3), 1043456   ;;  %v1648_v1 = vld [vmem:[%s2698_s1 + $0x8] sm:$0xf] (!%p159_p3)  ;;  %v2210_v2 = vmov (!%p159_p3), 0.0  }
   0x7   : > { %162 = sbr.rel (%p159_p3) target bundleno = 476 (0x1dc), region = 32  ;;  %1866 = vmatprep.subr.msk.mxu0 (!%p159_p3), %vm342_vm0, %v242_v0  ;;  %1868 = vmatprep.mubr.f32.mxu0 (!%p159_p3), %v2210_v2  ;;  %v1583_v3 = vld [vmem:[%s2698_s1 + $0x4] sm:$0xf] (!%p159_p3)  ;;  %p191_p4 = scmp.lt.s32.totalorder (!%p159_p3), %s2200_s12, 1  ;;  %vm245_vm1 = vcmask (!%p159_p3), 31744  }
   0x8   : > { %1867 = vmatpush3.msk.msra.mxu0 (!%p159_p3), %vm342_vm0, %v242_v0  ;;  %1816 = vmatprep.subr.msk.mxu1 (!%p159_p3), %vm342_vm0, %v1583_v3  ;;  %v2416_v52 = vld [vmem:[%s2699_s2] ss:$0 sm:$0xff] (!%p159_p3)  ;;  %s2211_s28 = smov (!%p159_p3), 124  }
   0x9   : > { %1869 = vmatmul.mubr.f32.vlgmr.msra.gmra.mrb[0].mxu0 (!%p159_p3), %v2210_v2  ;;  %1916 = vmatprep.subr.msk.mxu0 (!%p159_p3), %vm342_vm0, %v1648_v1 }
   0xa   : > { %1917 = vmatpush3.msk.msra.mxu0 (!%p159_p3), %vm342_vm0, %v1648_v1  ;;  %1817 = vmatpush3.msk.msra.mxu1 (!%p159_p3), %vm342_vm0, %v1583_v3 }
   0xb   : > { %1966 = vmatprep.subr.msk.mxu1 (!%p159_p3), %vm342_vm0, %v242_v0 }
   0xe   : > { %s2706_s12 = smov (!%p191_p4, %s2200_s12), 1 }
   0xf   : > { %s1715_s22 = sshll.u32 %s2706_s12, 8 }
  0x10   : > { %s2276_s25 = scalar_lea.vmem %s2697_s0, %s1715_s22  ;;  %s2590_s4 = scalar_lea.vmem %s2700_s3, %s1715_s22 }
  0x11   : > { %v210_v4 = vld [vmem:[%s2276_s25] sm:$0xff]  ;;  %v211_v5 = vld [vmem:[%s2276_s25 + $0x8] sm:$0xff]  ;;  %v212_v6 = vld [vmem:[%s2276_s25 + $0x10] sm:$0xff] }
  0x12   : > { %1818 = vmatprep.mubr.msk.f32.mxu1 %vm245_vm1, %v210_v4  ;;  %1871 = vmatprep.mubr.msk.f32.mxu0 %vm245_vm1, %v210_v4  ;;  %v213_v7 = vld [vmem:[%s2276_s25 + $0x18] sm:$0xff]  ;;  %v214_v8 = vld [vmem:[%s2276_s25 + $0x20] sm:$0xff]  ;;  %v215_v9 = vld [vmem:[%s2276_s25 + $0x28] sm:$0xff] }
  0x13   : > { %1819 = vmatmul.mubr.msk.f32.vlgmr.msra.gmra.mrb[0].mxu1 %vm245_vm1, %v211_v5  ;;  %1872 = vmatmul.mubr.msk.f32.gmra.mrb[2].mxu0 %vm245_vm1, %v211_v5  ;;  %v216_v10 = vld [vmem:[%s2276_s25 + $0x30] sm:$0xff]  ;;  %v217_v11 = vld [vmem:[%s2276_s25 + $0x38] sm:$0xff]  ;;  %v218_v12 = vld [vmem:[%s2276_s25 + $0x40] sm:$0xff] }
  0x14   : > { %1967 = vmatpush3.msk.msra.mxu1 %vm342_vm0, %v242_v0  ;;  %1821 = vmatprep.mubr.msk.f32.mxu1 %vm245_vm1, %v212_v6  ;;  %v219_v13 = vld [vmem:[%s2276_s25 + $0x48] sm:$0xff]  ;;  %v220_v14 = vld [vmem:[%s2276_s25 + $0x50] sm:$0xff]  ;;  %v221_v15 = vld [vmem:[%s2276_s25 + $0x58] sm:$0xff] }
  0x15   : > { %1874 = vmatprep.mubr.msk.f32.mxu0 %vm245_vm1, %v212_v6  ;;  %v222_v16 = vld [vmem:[%s2276_s25 + $0x60] sm:$0xff]  ;;  %v223_v17 = vld [vmem:[%s2276_s25 + $0x68] sm:$0xff]  ;;  %v224_v18 = vld [vmem:[%s2276_s25 + $0x70] sm:$0xff] }
  0x16   : > { %v225_v19 = vld [vmem:[%s2276_s25 + $0x78] sm:$0xff]  ;;  %v226_v20 = vld [vmem:[%s2276_s25 + $0x80] sm:$0xff]  ;;  %v227_v21 = vld [vmem:[%s2276_s25 + $0x88] sm:$0xff] }
  0x17   : > { %1822 = vmatmul.mubr.msk.f32.gmra.mrb[2].mxu1 %vm245_vm1, %v213_v7  ;;  %1875 = vmatmul.mubr.msk.f32.gmra.mrb[4].mxu0 %vm245_vm1, %v213_v7  ;;  %v228_v22 = vld [vmem:[%s2276_s25 + $0x90] sm:$0xff]  ;;  %v229_v23 = vld [vmem:[%s2276_s25 + $0x98] sm:$0xff]  ;;  %v230_v24 = vld [vmem:[%s2276_s25 + $0xa0] sm:$0xff] }
  0x18   : > { %1824 = vmatprep.mubr.msk.f32.mxu1 %vm245_vm1, %v214_v8  ;;  %1877 = vmatprep.mubr.msk.f32.mxu0 %vm245_vm1, %v214_v8  ;;  %v231_v25 = vld [vmem:[%s2276_s25 + $0xa8] sm:$0xff]  ;;  %v232_v26 = vld [vmem:[%s2276_s25 + $0xb0] sm:$0xff]  ;;  %v233_v27 = vld [vmem:[%s2276_s25 + $0xb8] sm:$0xff] }
  0x19   : > { %v234_v28 = vld [vmem:[%s2276_s25 + $0xc0] sm:$0xff]  ;;  %v235_v29 = vld [vmem:[%s2276_s25 + $0xc8] sm:$0xff]  ;;  %v236_v30 = vld [vmem:[%s2276_s25 + $0xd0] sm:$0xff] }
  0x1a   : > { %v237_v31 = vld [vmem:[%s2276_s25 + $0xd8] sm:$0xff]  ;;  %v238_v32 = vld [vmem:[%s2276_s25 + $0xe0] sm:$0xff]  ;;  %v239_v33 = vld [vmem:[%s2276_s25 + $0xe8] sm:$0xff] }
  0x1b   : > { %1825 = vmatmul.mubr.msk.f32.gmra.mrb[4].mxu1 %vm245_vm1, %v215_v9  ;;  %1878 = vmatmul.mubr.msk.f32.gmra.mrb[6].mxu0 %vm245_vm1, %v215_v9  ;;  %v240_v34 = vld [vmem:[%s2276_s25 + $0xf0] sm:$0xff]  ;;  %v241_v35 = vld [vmem:[%s2276_s25 + $0xf8] sm:$0xff] }
  0x1c   : > { %1827 = vmatprep.mubr.msk.f32.mxu1 %vm245_vm1, %v216_v10  ;;  %1880 = vmatprep.mubr.msk.f32.mxu0 %vm245_vm1, %v216_v10 }
  0x1f   : > { %1828 = vmatmul.mubr.msk.f32.gmra.mrb[6].mxu1 %vm245_vm1, %v217_v11  ;;  %1881 = vmatmul.mubr.msk.f32.gmra.mrb[8].mxu0 %vm245_vm1, %v217_v11 }
  0x20   : > { %1830 = vmatprep.mubr.msk.f32.mxu1 %vm245_vm1, %v218_v12  ;;  %1883 = vmatprep.mubr.msk.f32.mxu0 %vm245_vm1, %v218_v12 }
  0x23   : > { %1831 = vmatmul.mubr.msk.f32.gmra.mrb[8].mxu1 %vm245_vm1, %v219_v13  ;;  %1884 = vmatmul.mubr.msk.f32.gmra.mrb[10].mxu0 %vm245_vm1, %v219_v13 }
  0x24   : > { %1833 = vmatprep.mubr.msk.f32.mxu1 %vm245_vm1, %v220_v14  ;;  %1886 = vmatprep.mubr.msk.f32.mxu0 %vm245_vm1, %v220_v14 }
  0x27   : > { %1834 = vmatmul.mubr.msk.f32.gmra.mrb[10].mxu1 %vm245_vm1, %v221_v15  ;;  %1887 = vmatmul.mubr.msk.f32.gmra.mrb[12].mxu0 %vm245_vm1, %v221_v15 }
  0x28   : > { %1836 = vmatprep.mubr.msk.f32.mxu1 %vm245_vm1, %v222_v16  ;;  %1889 = vmatprep.mubr.msk.f32.mxu0 %vm245_vm1, %v222_v16 }
  0x2b   : > { %1837 = vmatmul.mubr.msk.f32.gmra.mrb[12].mxu1 %vm245_vm1, %v223_v17  ;;  %1890 = vmatmul.mubr.msk.f32.gmra.mrb[14].mxu0 %vm245_vm1, %v223_v17 }
  0x2c   : > { %1839 = vmatprep.mubr.msk.f32.mxu1 %vm245_vm1, %v224_v18  ;;  %1918 = vmatprep.mubr.msk.f32.mxu0 %vm245_vm1, %v212_v6 }
  0x2f   : > { %1840 = vmatmul.mubr.msk.f32.gmra.mrb[14].mxu1 %vm245_vm1, %v225_v19  ;;  %1919 = vmatmul.mubr.msk.f32.vlgmr.msra.gmra.mrb[0].mxu0 %vm245_vm1, %v213_v7 }
  0x30   : > { %1842 = vmatprep.mubr.msk.f32.mxu1 %vm245_vm1, %v226_v20  ;;  %1921 = vmatprep.mubr.msk.f32.mxu0 %vm245_vm1, %v214_v8 }
  0x33   : > { %1843 = vmatmul.mubr.msk.f32.gmra.mrb[16].mxu1 %vm245_vm1, %v227_v21  ;;  %1922 = vmatmul.mubr.msk.f32.gmra.mrb[2].mxu0 %vm245_vm1, %v215_v9 }
  0x34   : > { %1845 = vmatprep.mubr.msk.f32.mxu1 %vm245_vm1, %v228_v22  ;;  %1924 = vmatprep.mubr.msk.f32.mxu0 %vm245_vm1, %v216_v10 }
  0x37   : > { %1846 = vmatmul.mubr.msk.f32.gmra.mrb[18].mxu1 %vm245_vm1, %v229_v23  ;;  %1925 = vmatmul.mubr.msk.f32.gmra.mrb[4].mxu0 %vm245_vm1, %v217_v11 }
  0x38   : > { %1848 = vmatprep.mubr.msk.f32.mxu1 %vm245_vm1, %v230_v24  ;;  %1927 = vmatprep.mubr.msk.f32.mxu0 %vm245_vm1, %v218_v12 }
  0x3b   : > { %1849 = vmatmul.mubr.msk.f32.gmra.mrb[20].mxu1 %vm245_vm1, %v231_v25  ;;  %1928 = vmatmul.mubr.msk.f32.gmra.mrb[6].mxu0 %vm245_vm1, %v219_v13 }
  0x3c   : > { %1851 = vmatprep.mubr.msk.f32.mxu1 %vm245_vm1, %v232_v26  ;;  %1930 = vmatprep.mubr.msk.f32.mxu0 %vm245_vm1, %v220_v14 }
  0x3f   : > { %1852 = vmatmul.mubr.msk.f32.gmra.mrb[22].mxu1 %vm245_vm1, %v233_v27  ;;  %1931 = vmatmul.mubr.msk.f32.gmra.mrb[8].mxu0 %vm245_vm1, %v221_v15 }
  0x40   : > { %1854 = vmatprep.mubr.msk.f32.mxu1 %vm245_vm1, %v234_v28  ;;  %1933 = vmatprep.mubr.msk.f32.mxu0 %vm245_vm1, %v222_v16 }
  0x43   : > { %1855 = vmatmul.mubr.msk.f32.gmra.mrb[24].mxu1 %vm245_vm1, %v235_v29  ;;  %1934 = vmatmul.mubr.msk.f32.gmra.mrb[10].mxu0 %vm245_vm1, %v223_v17 }
  0x44   : > { %1857 = vmatprep.mubr.msk.f32.mxu1 %vm245_vm1, %v236_v30  ;;  %1936 = vmatprep.mubr.msk.f32.mxu0 %vm245_vm1, %v224_v18 }
  0x47   : > { %1858 = vmatmul.mubr.msk.f32.gmra.mrb[26].mxu1 %vm245_vm1, %v237_v31  ;;  %1937 = vmatmul.mubr.msk.f32.gmra.mrb[12].mxu0 %vm245_vm1, %v225_v19 }
  0x48   : > { %1860 = vmatprep.mubr.msk.f32.mxu1 %vm245_vm1, %v238_v32  ;;  %1939 = vmatprep.mubr.msk.f32.mxu0 %vm245_vm1, %v226_v20 }
  0x4b   : > { %1861 = vmatmul.mubr.msk.f32.gmra.mrb[28].mxu1 %vm245_vm1, %v239_v33  ;;  %1940 = vmatmul.mubr.msk.f32.gmra.mrb[14].mxu0 %vm245_vm1, %v227_v21 }
  0x4c   : > { %1863 = vmatprep.mubr.msk.f32.mxu1 %vm245_vm1, %v240_v34  ;;  %1942 = vmatprep.mubr.msk.f32.mxu0 %vm245_vm1, %v228_v22 }
  0x4f   : > { %1864 = vmatmul.mubr.msk.f32.gmra.mrb[30].mxu1 %vm245_vm1, %v241_v35  ;;  %1943 = vmatmul.mubr.msk.f32.gmra.mrb[16].mxu0 %vm245_vm1, %v229_v23 }
  0x50   : > { %1892 = vmatprep.mubr.msk.f32.mxu1 %vm245_vm1, %v224_v18  ;;  %1945 = vmatprep.mubr.msk.f32.mxu0 %vm245_vm1, %v230_v24 }
  0x53   : > { %1893 = vmatmul.mubr.msk.f32.vlgmr.msra.gmra.mrb[16].mxu1 %vm245_vm1, %v225_v19  ;;  %1946 = vmatmul.mubr.msk.f32.gmra.mrb[18].mxu0 %vm245_vm1, %v231_v25 }
  0x54   : > { %1895 = vmatprep.mubr.msk.f32.mxu1 %vm245_vm1, %v226_v20  ;;  %1948 = vmatprep.mubr.msk.f32.mxu0 %vm245_vm1, %v232_v26 }
  0x57   : > { %1896 = vmatmul.mubr.msk.f32.gmra.mrb[18].mxu1 %vm245_vm1, %v227_v21  ;;  %1949 = vmatmul.mubr.msk.f32.gmra.mrb[20].mxu0 %vm245_vm1, %v233_v27 }
  0x58   : > { %1898 = vmatprep.mubr.msk.f32.mxu1 %vm245_vm1, %v228_v22  ;;  %1951 = vmatprep.mubr.msk.f32.mxu0 %vm245_vm1, %v234_v28 }
  0x5b   : > { %1899 = vmatmul.mubr.msk.f32.gmra.mrb[20].mxu1 %vm245_vm1, %v229_v23  ;;  %1952 = vmatmul.mubr.msk.f32.gmra.mrb[22].mxu0 %vm245_vm1, %v235_v29 }
  0x5c   : > { %1901 = vmatprep.mubr.msk.f32.mxu1 %vm245_vm1, %v230_v24  ;;  %1954 = vmatprep.mubr.msk.f32.mxu0 %vm245_vm1, %v236_v30 }
  0x5f   : > { %1902 = vmatmul.mubr.msk.f32.gmra.mrb[22].mxu1 %vm245_vm1, %v231_v25  ;;  %1955 = vmatmul.mubr.msk.f32.gmra.mrb[24].mxu0 %vm245_vm1, %v237_v31 }
  0x60   : > { %1904 = vmatprep.mubr.msk.f32.mxu1 %vm245_vm1, %v232_v26  ;;  %1957 = vmatprep.mubr.msk.f32.mxu0 %vm245_vm1, %v238_v32 }
  0x63   : > { %1905 = vmatmul.mubr.msk.f32.gmra.mrb[24].mxu1 %vm245_vm1, %v233_v27  ;;  %1958 = vmatmul.mubr.msk.f32.gmra.mrb[26].mxu0 %vm245_vm1, %v239_v33 }
  0x64   : > { %1907 = vmatprep.mubr.msk.f32.mxu1 %vm245_vm1, %v234_v28  ;;  %1960 = vmatprep.mubr.msk.f32.mxu0 %vm245_vm1, %v240_v34 }
  0x67   : > { %1908 = vmatmul.mubr.msk.f32.gmra.mrb[26].mxu1 %vm245_vm1, %v235_v29  ;;  %1961 = vmatmul.mubr.msk.f32.gmra.mrb[28].mxu0 %vm245_vm1, %v241_v35 }
  0x68   : > { %1910 = vmatprep.mubr.msk.f32.mxu1 %vm245_vm1, %v236_v30  ;;  %1963 = vmatprep.mubr.f32.mxu0 %v2210_v2 }
  0x6b   : > { %1911 = vmatmul.mubr.msk.f32.gmra.mrb[28].mxu1 %vm245_vm1, %v237_v31  ;;  %1964 = vmatmul.mubr.f32.gmra.mrb[30].mxu0 %v2210_v2 }
  0x6c   : > { %1913 = vmatprep.mubr.msk.f32.mxu1 %vm245_vm1, %v238_v32 }
  0x6f   : > { %1914 = vmatmul.mubr.msk.f32.gmra.mrb[30].mxu1 %vm245_vm1, %v239_v33 }
  0xe6   : > { %v1820_v36 = vpop.f32.mrb[0].mxu1 }
  0xe7   : > { %v412_v37 = vpop.f32.mrb[1].mxu1 }
  0xea   : > { %v1823_v38 = vpop.f32.mrb[2].mxu1 }
  0xeb   : > { %v422_v39 = vpop.f32.mrb[3].mxu1 }
  0xee   : > { %v1826_v40 = vpop.f32.mrb[4].mxu1 }
  0xef   : > { %v432_v41 = vpop.f32.mrb[5].mxu1 }
  0xf2   : > { %v1829_v42 = vpop.f32.mrb[6].mxu1 }
  0xf3   : > { %v442_v43 = vpop.f32.mrb[7].mxu1 }
  0xf6   : > { %v1832_v44 = vpop.f32.mrb[8].mxu1 }
  0xf7   : > { %v452_v45 = vpop.f32.mrb[9].mxu1 }
  0xfa   : > { %v1835_v46 = vpop.f32.mrb[10].mxu1 }
  0xfb   : > { %v2405_v47 = vpop.f32.mrb[11].mxu1 }
  0xfe   : > { %v2407_v48 = vpop.f32.mrb[12].mxu1 }
  0xff   : > { %v2409_v49 = vpop.f32.mrb[13].mxu1 }
 0x102   : > { %v2411_v50 = vpop.f32.mrb[14].mxu1  ;;  %v1920_v51 = vpop.f32.mrb[0].mxu0 }
 0x103   : > { %v1968_v53 = vadd.f32 %v1920_v51, %v1820_v36  ;;  %v2418_v54 = vpop.f32.mrb[15].mxu1  ;;  %v873_v55 = vpop.f32.mrb[1].mxu0 }
 0x104   : > { %v1969_v56 = vadd.f32 %v873_v55, %v412_v37 }
 0x105   : > { %v2421_v57 = vadd.f32 %v1968_v53, %v2416_v52 }
 0x106   : > { %v2424_v58 = vadd.f32 %v1969_v56, %v2416_v52  ;;  %v1923_v59 = vpop.f32.mrb[2].mxu0 }
 0x107   : > { %v1682_v60 = vmul.f32 -1.442695, %v2421_v57  ;;  %v1970_v61 = vadd.f32 %v1923_v59, %v1823_v38  ;;  %v883_v62 = vpop.f32.mrb[3].mxu0 }
 0x108   : > { %v1681_v63 = vmul.f32 -1.442695, %v2424_v58  ;;  %v1971_v0 = vadd.f32 %v883_v62, %v422_v39 }
 0x109   : > { %2058 = vpow2.f32 %v1682_v60  ;;  %v2429_v1 = vadd.f32 %v1970_v61, %v2416_v52 }
 0x10a   : > { %2060 = vpow2.f32 %v1681_v63  ;;  %v2432_v2 = vadd.f32 %v1971_v0, %v2416_v52  ;;  %v1926_v3 = vpop.f32.mrb[4].mxu0 }
 0x10b   : > { %v1684_v4 = vmul.f32 -1.442695, %v2429_v1  ;;  %v1972_v5 = vadd.f32 %v1926_v3, %v1826_v40  ;;  %v893_v6 = vpop.f32.mrb[5].mxu0 }
 0x10c   : > { %v1683_v7 = vmul.f32 -1.442695, %v2432_v2  ;;  %v1973_v8 = vadd.f32 %v893_v6, %v432_v41 }
 0x10d   : > { %2062 = vpow2.f32 %v1684_v4  ;;  %v2437_v9 = vadd.f32 %v1972_v5, %v2416_v52 }
 0x10e   : > { %2064 = vpow2.f32 %v1683_v7  ;;  %v2440_v10 = vadd.f32 %v1973_v8, %v2416_v52  ;;  %v1929_v11 = vpop.f32.mrb[6].mxu0 }
 0x10f   : > { %v1686_v12 = vmul.f32 -1.442695, %v2437_v9  ;;  %v1974_v13 = vadd.f32 %v1929_v11, %v1829_v42  ;;  %v903_v14 = vpop.f32.mrb[7].mxu0 }
 0x110   : > { %v1685_v15 = vmul.f32 -1.442695, %v2440_v10  ;;  %v1975_v16 = vadd.f32 %v903_v14, %v442_v43 }
 0x111   : > { %2066 = vpow2.f32 %v1686_v12  ;;  %v2445_v17 = vadd.f32 %v1974_v13, %v2416_v52 }
 0x112   : > { %2068 = vpow2.f32 %v1685_v15  ;;  %v2448_v18 = vadd.f32 %v1975_v16, %v2416_v52  ;;  %v1932_v19 = vpop.f32.mrb[8].mxu0 }
 0x113   : > { %v2059_v20 = vpop.eup %2058  ;;  %v1688_v21 = vmul.f32 -1.442695, %v2445_v17  ;;  %v1976_v22 = vadd.f32 %v1932_v19, %v1832_v44  ;;  %v913_v23 = vpop.f32.mrb[9].mxu0 }
 0x114   : > { %v2061_v24 = vpop.eup %2060  ;;  %v1200_v25 = vadd.f32 1.0, %v2059_v20  ;;  %v1687_v26 = vmul.f32 -1.442695, %v2448_v18  ;;  %v1977_v27 = vadd.f32 %v913_v23, %v452_v45 }
 0x115   : > { %v1199_v28 = vadd.f32 1.0, %v2061_v24  ;;  %2070 = vpow2.f32 %v1688_v21  ;;  %v2453_v29 = vadd.f32 %v1976_v22, %v2416_v52 }
 0x116   : > { %2072 = vrcp.f32 %v1200_v25  ;;  %v2456_v30 = vadd.f32 %v1977_v27, %v2416_v52  ;;  %v1935_v31 = vpop.f32.mrb[10].mxu0 }
 0x117   : > { %v2063_v32 = vpop.eup %2062  ;;  %2074 = vrcp.f32 %v1199_v28  ;;  %v1690_v33 = vmul.f32 -1.442695, %v2453_v29  ;;  %v1978_v34 = vadd.f32 %v1935_v31, %v1835_v46  ;;  %v923_v35 = vpop.f32.mrb[11].mxu0 }
 0x118   : > { %v2065_v36 = vpop.eup %2064  ;;  %v1202_v37 = vadd.f32 1.0, %v2063_v32  ;;  %2076 = vpow2.f32 %v1687_v26  ;;  %v1689_v38 = vmul.f32 -1.442695, %v2456_v30  ;;  %v1979_v39 = vadd.f32 %v923_v35, %v2405_v47 }
 0x119   : > { %2078 = vpow2.f32 %v1690_v33  ;;  %v2462_v40 = vadd.f32 %v1978_v34, %v2416_v52  ;;  %v1201_v41 = vadd.f32 1.0, %v2065_v36 }
 0x11a   : > { %2080 = vrcp.f32 %v1202_v37  ;;  %v2465_v42 = vadd.f32 %v1979_v39, %v2416_v52  ;;  %v1938_v43 = vpop.f32.mrb[12].mxu0 }
 0x11b   : > { %v2067_v44 = vpop.eup %2066  ;;  %v1692_v45 = vmul.f32 -1.442695, %v2462_v40  ;;  %v1980_v46 = vadd.f32 %v1938_v43, %v2407_v48  ;;  %v933_v51 = vpop.f32.mrb[13].mxu0  ;;  %2082 = vpow2.f32 %v1689_v38 }
 0x11c   : > { %v2069_v53 = vpop.eup %2068  ;;  %v1691_v47 = vmul.f32 -1.442695, %v2465_v42  ;;  %v1981_v55 = vadd.f32 %v933_v51, %v2409_v49  ;;  %v1204_v60 = vadd.f32 1.0, %v2067_v44 }
 0x11d   : > { %v1203_v56 = vadd.f32 1.0, %v2069_v53  ;;  %2084 = vpow2.f32 %v1692_v45  ;;  %v2472_v59 = vadd.f32 %v1980_v46, %v2416_v52 }
 0x11e   : > { %2086 = vrcp.f32 %v1201_v41  ;;  %v2475_v61 = vadd.f32 %v1981_v55, %v2416_v52  ;;  %v1941_v62 = vpop.f32.mrb[14].mxu0 }
 0x11f   : > { %v2071_v63 = vpop.eup %2070  ;;  %2088 = vrcp.f32 %v1203_v56  ;;  %v1694_v48 = vmul.f32 -1.442695, %v2472_v59  ;;  %v1982_v0 = vadd.f32 %v1941_v62, %v2411_v50  ;;  %v943_v3 = vpop.f32.mrb[15].mxu0 }
 0x120   : > { %v2073_v4 = vpop.eup %2072  ;;  %2090 = vpow2.f32 %v1691_v47  ;;  %v1693_v49 = vmul.f32 -1.442695, %v2475_v61  ;;  %v1983_v5 = vadd.f32 %v943_v3, %v2418_v54  ;;  %v1206_v11 = vadd.f32 1.0, %v2071_v63 }
 0x121   : > { %v2075_v6 = vpop.eup %2074  ;;  %2092 = vpow2.f32 %v1694_v48  ;;  %v2482_v7 = vadd.f32 %v1982_v0, %v2416_v52  ;;  %1329 = vrot.lane.b32.xlu0 %v2073_v4, %s2211_s28 }
 0x122   : > { %v2077_v8 = vpop.eup %2076  ;;  %2094 = vrcp.f32 %v1204_v60  ;;  %v2486_v50 = vadd.f32 %v1983_v5, %v2416_v52  ;;  %v1944_v12 = vpop.f32.mrb[16].mxu0 }
 0x123   : > { %v2079_v13 = vpop.eup %2078  ;;  %v1205_v14 = vadd.f32 1.0, %v2077_v8  ;;  %2096 = vpow2.f32 %v1693_v49  ;;  %v1696_v54 = vmul.f32 -1.442695, %v2482_v7  ;;  %v953_v15 = vpop.f32.mrb[17].mxu0 }
 0x124   : > { %v2081_v16 = vpop.eup %2080  ;;  %v1695_v19 = vmul.f32 -1.442695, %v2486_v50  ;;  %v1208_v21 = vadd.f32 1.0, %v2079_v13 }
 0x125   : > { %2098 = vrcp.f32 %v1205_v14  ;;  %1327 = vrot.lane.b32.xlu0 %v2075_v6, %s2211_s28  ;;  %1333 = vrot.lane.b32.xlu1 %v2081_v16, %s2211_s28  ;;  %v2083_v20 = vpop.eup %2082 }
 0x126   : > { %2100 = vrcp.f32 %v1206_v11  ;;  %v1894_v22 = vpop.f32.mrb[16].mxu1  ;;  %v1947_v23 = vpop.f32.mrb[18].mxu0  ;;  %v1207_v25 = vadd.f32 1.0, %v2083_v20 }
 0x127   : > { %v2085_v24 = vpop.eup %2084  ;;  %2102 = vpow2.f32 %v1696_v54  ;;  %v1984_v26 = vadd.f32 %v1944_v12, %v1894_v22  ;;  %v723_v27 = vpop.f32.mrb[17].mxu1 }
 0x128   : > { %v963_v28 = vpop.f32.mrb[19].mxu0  ;;  %v2087_v31 = vpop.eup %2086  ;;  %v1210_v32 = vadd.f32 1.0, %v2085_v24  ;;  %2104 = vpow2.f32 %v1695_v19  ;;  %v1985_v33 = vadd.f32 %v953_v15, %v723_v27 }
 0x129   : > { %v2089_v34 = vpop.eup %2088  ;;  %2106 = vrcp.f32 %v1207_v25  ;;  %v2493_v35 = vadd.f32 %v1984_v26, %v2416_v52  ;;  %1331 = vrot.lane.b32.xlu1 %v2087_v31, %s2211_s28 }
 0x12a   : > { %v2091_v36 = vpop.eup %2090  ;;  %2108 = vrcp.f32 %v1208_v21  ;;  %v2497_v37 = vadd.f32 %v1985_v33, %v2416_v52  ;;  %1335 = vrot.lane.b32.xlu0 %v2089_v34, %s2211_s28  ;;  %v1897_v38 = vpop.f32.mrb[18].mxu1 }
 0x12b   : > { %v1950_v39 = vpop.f32.mrb[20].mxu0  ;;  %v2093_v41 = vpop.eup %2092  ;;  %v1209_v43 = vadd.f32 1.0, %v2091_v36  ;;  %v1698_v44 = vmul.f32 -1.442695, %v2493_v35  ;;  %v1986_v45 = vadd.f32 %v1947_v23, %v1897_v38  ;;  %2110 = vrcp.f32 %v1210_v32 }
 0x12c   : > { %v733_v46 = vpop.f32.mrb[19].mxu1  ;;  %v973_v51 = vpop.f32.mrb[21].mxu0  ;;  %v1212_v47 = vadd.f32 1.0, %v2093_v41  ;;  %v1697_v60 = vmul.f32 -1.442695, %v2497_v37 }
 0x12d   : > { %v2095_v53 = vpop.eup %2094  ;;  %v1987_v55 = vadd.f32 %v963_v28, %v733_v46  ;;  %2112 = vrcp.f32 %v1209_v43  ;;  %v2503_v62 = vadd.f32 %v1986_v45, %v2416_v52 }
 0x12e   : > { %v2097_v56 = vpop.eup %2096  ;;  %1337 = vrot.lane.b32.xlu1 %v2095_v53, %s2211_s28  ;;  %2114 = vrcp.f32 %v1212_v47  ;;  %v1900_v0 = vpop.f32.mrb[20].mxu1 }
 0x12f   : > { %v1211_v63 = vadd.f32 1.0, %v2097_v56  ;;  %v2507_v48 = vadd.f32 %v1987_v55, %v2416_v52  ;;  %v1953_v3 = vpop.f32.mrb[22].mxu0  ;;  %v2099_v4 = vpop.eup %2098  ;;  %2116 = vpow2.f32 %v1698_v44  ;;  %v1700_v49 = vmul.f32 -1.442695, %v2503_v62 }
 0x130   : > { %v1988_v5 = vadd.f32 %v1950_v39, %v1900_v0  ;;  %v743_v6 = vpop.f32.mrb[21].mxu1  ;;  %v983_v8 = vpop.f32.mrb[23].mxu0  ;;  %1339 = vrot.lane.b32.xlu0 %v2099_v4, %s2211_s28 }
 0x131   : > { %v2101_v11 = vpop.eup %2100  ;;  %2118 = vrcp.f32 %v1211_v63  ;;  %v1699_v12 = vmul.f32 -1.442695, %v2507_v48  ;;  %v1989_v13 = vadd.f32 %v973_v51, %v743_v6 }
 0x132   : > { %v2103_v14 = vpop.eup %2102  ;;  %2120 = vpow2.f32 %v1697_v60  ;;  %v2513_v54 = vadd.f32 %v1988_v5, %v2416_v52  ;;  %1341 = vrot.lane.b32.xlu1 %v2101_v11, %s2211_s28  ;;  %v1903_v20 = vpop.f32.mrb[22].mxu1 }
 0x133   : > { %v2105_v15 = vpop.eup %2104  ;;  %v1214_v16 = vadd.f32 1.0, %v2103_v14  ;;  %2122 = vpow2.f32 %v1700_v49  ;;  %v2517_v19 = vadd.f32 %v1989_v13, %v2416_v52  ;;  %v1956_v21 = vpop.f32.mrb[24].mxu0  ;;  %v1990_v25 = vadd.f32 %v1953_v3, %v1903_v20 }
 0x134   : > { %v2107_v22 = vpop.eup %2106  ;;  %v1213_v23 = vadd.f32 1.0, %v2105_v15  ;;  %2124 = vpow2.f32 %v1699_v12  ;;  %v1702_v24 = vmul.f32 -1.442695, %v2513_v54  ;;  %v753_v26 = vpop.f32.mrb[23].mxu1 }
 0x135   : > { %v993_v27 = vpop.f32.mrb[25].mxu0  ;;  %v2109_v28 = vpop.eup %2108  ;;  %2126 = vrcp.f32 %v1214_v16  ;;  %v1701_v31 = vmul.f32 -1.442695, %v2517_v19  ;;  %1343 = vrot.lane.b32.xlu0 %v2107_v22, %s2211_s28  ;;  %v1991_v32 = vadd.f32 %v983_v8, %v753_v26  ;;  %v2523_v33 = vadd.f32 %v1990_v25, %v2416_v52 }
 0x136   : > { %2128 = vrcp.f32 %v1213_v23  ;;  %1345 = vrot.lane.b32.xlu1 %v2109_v28, %s2211_s28  ;;  %v2111_v34 = vpop.eup %2110  ;;  %v1906_v38 = vpop.f32.mrb[24].mxu1 }
 0x137   : > { %2130 = vpow2.f32 %v1702_v24  ;;  %v2527_v36 = vadd.f32 %v1991_v32, %v2416_v52  ;;  %v1959_v39 = vpop.f32.mrb[26].mxu0  ;;  %v2113_v41 = vpop.eup %2112  ;;  %v1704_v43 = vmul.f32 -1.442695, %v2523_v33  ;;  %v1992_v44 = vadd.f32 %v1956_v21, %v1906_v38 }
 0x138   : > { %2132 = vpow2.f32 %v1701_v31  ;;  %v763_v45 = vpop.f32.mrb[25].mxu1  ;;  %v1003_v46 = vpop.f32.mrb[27].mxu0 }
 0x139   : > { %v2115_v51 = vpop.eup %2114  ;;  %v1703_v53 = vmul.f32 -1.442695, %v2527_v36  ;;  %1347 = vrot.lane.b32.xlu0 %v2113_v41, %s2211_s28  ;;  %v1993_v47 = vadd.f32 %v993_v27, %v763_v45  ;;  %2134 = vpow2.f32 %v1704_v43  ;;  %v2533_v56 = vadd.f32 %v1992_v44, %v2416_v52 }
 0x13a   : > { %v2117_v55 = vpop.eup %2116  ;;  %1349 = vrot.lane.b32.xlu1 %v2111_v34, %s2211_s28  ;;  %v1909_v3 = vpop.f32.mrb[26].mxu1 }
 0x13b   : > { %v2119_v60 = vpop.eup %2118  ;;  %v1216_v63 = vadd.f32 1.0, %v2117_v55  ;;  %2136 = vpow2.f32 %v1703_v53  ;;  %v2537_v0 = vadd.f32 %v1993_v47, %v2416_v52  ;;  %v1962_v4 = vpop.f32.mrb[28].mxu0  ;;  %v1706_v5 = vmul.f32 -1.442695, %v2533_v56 }
 0x13c   : > { %v2121_v49 = vpop.eup %2120  ;;  %v1994_v6 = vadd.f32 %v1959_v39, %v1909_v3  ;;  %v773_v8 = vpop.f32.mrb[27].mxu1 }
 0x13d   : > { %v1013_v11 = vpop.f32.mrb[29].mxu0  ;;  %v2123_v12 = vpop.eup %2122  ;;  %2138 = vrcp.f32 %v1216_v63  ;;  %v1215_v13 = vadd.f32 1.0, %v2121_v49  ;;  %1351 = vrot.lane.b32.xlu0 %v2119_v60, %s2211_s28  ;;  %v1995_v14 = vadd.f32 %v1003_v46, %v773_v8  ;;  %v1705_v20 = vmul.f32 -1.442695, %v2537_v0 }
 0x13e   : > { %v2125_v15 = vpop.eup %2124  ;;  %v1218_v16 = vadd.f32 1.0, %v2123_v12  ;;  %2140 = vpow2.f32 %v1706_v5  ;;  %v2543_v21 = vadd.f32 %v1994_v6, %v2416_v52  ;;  %1353 = vrot.lane.b32.xlu1 %v2115_v51, %s2211_s28  ;;  %v1912_v25 = vpop.f32.mrb[28].mxu1 }
 0x13f   : > { %v2127_v22 = vpop.eup %2126  ;;  %2142 = vrcp.f32 %v1215_v13  ;;  %v1217_v23 = vadd.f32 1.0, %v2125_v15  ;;  %v2547_v24 = vadd.f32 %v1995_v14, %v2416_v52  ;;  %v1965_v26 = vpop.f32.mrb[30].mxu0  ;;  %v1996_v31 = vadd.f32 %v1962_v4, %v1912_v25 }
 0x140   : > { %v2129_v27 = vpop.eup %2128  ;;  %2144 = vrcp.f32 %v1218_v16  ;;  %v1708_v28 = vmul.f32 -1.442695, %v2543_v21  ;;  %v783_v32 = vpop.f32.mrb[29].mxu1 }
 0x141   : > { %v1023_v34 = vpop.f32.mrb[31].mxu0  ;;  %v2131_v38 = vpop.eup %2130  ;;  %2146 = vrcp.f32 %v1217_v23  ;;  %1355 = vrot.lane.b32.xlu0 %v2129_v27, %s2211_s28  ;;  %v1997_v39 = vadd.f32 %v1013_v11, %v783_v32  ;;  %v1707_v44 = vmul.f32 -1.442695, %v2547_v24  ;;  %v2553_v45 = vadd.f32 %v1996_v31, %v2416_v52 }
 0x142   : > { %v2133_v41 = vpop.eup %2132  ;;  %v1220_v43 = vadd.f32 1.0, %v2131_v38  ;;  %2148 = vpow2.f32 %v1705_v20  ;;  %1357 = vrot.lane.b32.xlu1 %v2127_v22, %s2211_s28  ;;  %v1915_v53 = vpop.f32.mrb[30].mxu1 }
 0x143   : > { %v1219_v46 = vadd.f32 1.0, %v2133_v41  ;;  %2150 = vpow2.f32 %v1708_v28  ;;  %v2557_v51 = vadd.f32 %v1997_v39, %v2416_v52  ;;  %v2135_v47 = vpop.eup %2134  ;;  %v1998_v55 = vadd.f32 %v1965_v26, %v1915_v53  ;;  %v793_v60 = vpop.f32.mrb[31].mxu1 }
 0x144   : > { %2152 = vrcp.f32 %v1220_v43  ;;  %v1222_v3 = vadd.f32 1.0, %v2135_v47  ;;  %v1710_v4 = vmul.f32 -1.442695, %v2553_v45  ;;  %v1999_v49 = vadd.f32 %v1023_v34, %v793_v60 }
 0x145   : > { %v2137_v63 = vpop.eup %2136  ;;  %2154 = vrcp.f32 %v1219_v46  ;;  %v1709_v6 = vmul.f32 -1.442695, %v2557_v51  ;;  %v2562_v8 = vadd.f32 %v1998_v55, %v2416_v52 }
 0x146   : > { %v1221_v5 = vadd.f32 1.0, %v2137_v63  ;;  %2156 = vpow2.f32 %v1707_v44  ;;  %v2565_v12 = vadd.f32 %v1999_v49, %v2416_v52 }
 0x147   : > { %v2139_v11 = vpop.eup %2138  ;;  %2158 = vrcp.f32 %v1222_v3  ;;  %v1712_v14 = vmul.f32 -1.442695, %v2562_v8 }
 0x148   : > { %v2141_v13 = vpop.eup %2140  ;;  %2160 = vrcp.f32 %v1221_v5  ;;  %1361 = vrot.lane.b32.xlu1 %v2139_v11, %s2211_s28  ;;  %v1711_v20 = vmul.f32 -1.442695, %v2565_v12 }
 0x149   : > { %v2143_v15 = vpop.eup %2142  ;;  %v1224_v16 = vadd.f32 1.0, %v2141_v13  ;;  %2162 = vpow2.f32 %v1710_v4 }
 0x14a   : > { %v2145_v22 = vpop.eup %2144  ;;  %2164 = vpow2.f32 %v1709_v6  ;;  %1359 = vrot.lane.b32.xlu0 %v2143_v15, %s2211_s28 }
 0x14b   : > { %v2147_v23 = vpop.eup %2146  ;;  %2166 = vrcp.f32 %v1224_v16 }
 0x14c   : > { %v2149_v25 = vpop.eup %2148  ;;  %2168 = vpow2.f32 %v1712_v14  ;;  %1365 = vrot.lane.b32.xlu1 %v2145_v22, %s2211_s28 }
 0x14d   : > { %v2151_v52 = vpop.eup %2150  ;;  %v1223_v26 = vadd.f32 1.0, %v2149_v25  ;;  %2170 = vpow2.f32 %v1711_v20 }
 0x14e   : > { %v2153_v27 = vpop.eup %2152  ;;  %v1226_v28 = vadd.f32 1.0, %v2151_v52  ;;  %1363 = vrot.lane.b32.xlu0 %v2147_v23, %s2211_s28 }
 0x14f   : > { %v2155_v31 = vpop.eup %2154  ;;  %2172 = vrcp.f32 %v1223_v26 }
 0x150   : > { %v2157_v32 = vpop.eup %2156  ;;  %2174 = vrcp.f32 %v1226_v28  ;;  %1369 = vrot.lane.b32.xlu1 %v2153_v27, %s2211_s28 }
 0x151   : > { %v2159_v34 = vpop.eup %2158  ;;  %v1225_v38 = vadd.f32 1.0, %v2157_v32 }
 0x152   : > { %v2161_v39 = vpop.eup %2160  ;;  %1367 = vrot.lane.b32.xlu0 %v2155_v31, %s2211_s28 }
 0x153   : > { %v2163_v41 = vpop.eup %2162  ;;  %2176 = vrcp.f32 %v1225_v38 }
 0x154   : > { %v2165_v43 = vpop.eup %2164  ;;  %v1228_v44 = vadd.f32 1.0, %v2163_v41  ;;  %1373 = vrot.lane.b32.xlu1 %v2159_v34, %s2211_s28 }
 0x155   : > { %v2167_v46 = vpop.eup %2166  ;;  %v1227_v53 = vadd.f32 1.0, %v2165_v43 }
 0x156   : > { %v2169_v47 = vpop.eup %2168  ;;  %2178 = vrcp.f32 %v1228_v44  ;;  %1371 = vrot.lane.b32.xlu0 %v2161_v39, %s2211_s28 }
 0x157   : > { %v2171_v55 = vpop.eup %2170  ;;  %2180 = vrcp.f32 %v1227_v53  ;;  %v1230_v60 = vadd.f32 1.0, %v2169_v47 }
 0x158   : > { %v1229_v63 = vadd.f32 1.0, %v2171_v55  ;;  %1377 = vrot.lane.b32.xlu1 %v2167_v46, %s2211_s28 }
 0x159   : > { %v2173_v3 = vpop.eup %2172  ;;  %2182 = vrcp.f32 %v1230_v60 }
 0x15a   : > { %v2175_v4 = vpop.eup %2174  ;;  %2184 = vrcp.f32 %v1229_v63  ;;  %1375 = vrot.lane.b32.xlu0 %v2173_v3, %s2211_s28 }
 0x15c   : > { %1381 = vrot.lane.b32.xlu1 %v2175_v4, %s2211_s28 }
 0x15d   : > { %v2177_v49 = vpop.eup %2176 }
 0x15e   : > { %1379 = vrot.lane.b32.xlu0 %v2177_v49, %s2211_s28 }
 0x160   : > { %v2179_v5 = vpop.eup %2178 }
 0x161   : > { %v2181_v6 = vpop.eup %2180  ;;  %1385 = vrot.lane.b32.xlu1 %v2179_v5, %s2211_s28 }
 0x162   : > { %1383 = vrot.lane.b32.xlu0 %v2181_v6, %s2211_s28 }
 0x163   : > { %v2183_v11 = vpop.eup %2182 }
 0x164   : > { %v2185_v13 = vpop.eup %2184 }
 0x165   : > { %1389 = vrot.lane.b32.xlu1 %v2183_v11, %s2211_s28 }
 0x166   : > { %1387 = vrot.lane.b32.xlu0 %v2185_v13, %s2211_s28 }
 0x193   : > { %v1330_v14 = vpop.permute.xlu0 %1329 }
 0x194   : > { %v1424_v15 = vmul.f32 %v1330_v14, %v2421_v57 }
 0x196   : > { %1456 = vst.msk [vmem:[%s2590_s4 + $0x8] sm:$0xff] %vm245_vm1, %v1424_v15 }
 0x197   : > { %v1328_v16 = vpop.permute.xlu0 %1327  ;;  %v1334_v20 = vpop.permute.xlu1 %1333 }
 0x198   : > { %v1423_v22 = vmul.f32 %v1328_v16, %v2424_v58  ;;  %v1426_v23 = vmul.f32 %v1334_v20, %v2429_v1 }
 0x19a   : > { %1455 = vst.msk [vmem:[%s2590_s4] sm:$0xff] %vm245_vm1, %v1423_v22  ;;  %1458 = vst.msk [vmem:[%s2590_s4 + $0x18] sm:$0xff] %vm245_vm1, %v1426_v23 }
 0x19b   : > { %v1332_v25 = vpop.permute.xlu1 %1331 }
 0x19c   : > { %v1425_v52 = vmul.f32 %v1332_v25, %v2432_v2  ;;  %v1336_v26 = vpop.permute.xlu0 %1335 }
 0x19d   : > { %v1427_v57 = vmul.f32 %v1336_v26, %v2440_v10 }
 0x19e   : > { %1457 = vst.msk [vmem:[%s2590_s4 + $0x10] sm:$0xff] %vm245_vm1, %v1425_v52 }
 0x19f   : > { %1459 = vst.msk [vmem:[%s2590_s4 + $0x20] sm:$0xff] %vm245_vm1, %v1427_v57 }
 0x1a0   : > { %v1338_v58 = vpop.permute.xlu1 %1337 }
 0x1a1   : > { %v1428_v1 = vmul.f32 %v1338_v58, %v2437_v9 }
 0x1a2   : > { %v1340_v27 = vpop.permute.xlu0 %1339 }
 0x1a3   : > { %1460 = vst.msk [vmem:[%s2590_s4 + $0x28] sm:$0xff] %vm245_vm1, %v1428_v1  ;;  %v1429_v28 = vmul.f32 %v1340_v27, %v2448_v18 }
 0x1a4   : > { %v1342_v2 = vpop.permute.xlu1 %1341 }
 0x1a5   : > { %v1430_v31 = vmul.f32 %v1342_v2, %v2445_v17  ;;  %1461 = vst.msk [vmem:[%s2590_s4 + $0x30] sm:$0xff] %vm245_vm1, %v1429_v28 }
 0x1a7   : > { %1462 = vst.msk [vmem:[%s2590_s4 + $0x38] sm:$0xff] %vm245_vm1, %v1430_v31  ;;  %v1344_v10 = vpop.permute.xlu0 %1343 }
 0x1a8   : > { %v1431_v32 = vmul.f32 %v1344_v10, %v2456_v30  ;;  %v1346_v9 = vpop.permute.xlu1 %1345 }
 0x1a9   : > { %v1432_v34 = vmul.f32 %v1346_v9, %v2453_v29 }
 0x1aa   : > { %1463 = vst.msk [vmem:[%s2590_s4 + $0x40] sm:$0xff] %vm245_vm1, %v1431_v32 }
 0x1ab   : > { %1464 = vst.msk [vmem:[%s2590_s4 + $0x48] sm:$0xff] %vm245_vm1, %v1432_v34  ;;  %v1348_v18 = vpop.permute.xlu0 %1347 }
 0x1ac   : > { %v1433_v17 = vmul.f32 %v1348_v18, %v2465_v42  ;;  %v1350_v38 = vpop.permute.xlu1 %1349 }
 0x1ad   : > { %v1434_v39 = vmul.f32 %v1350_v38, %v2462_v40 }
 0x1ae   : > { %1465 = vst.msk [vmem:[%s2590_s4 + $0x50] sm:$0xff] %vm245_vm1, %v1433_v17 }
 0x1af   : > { %1466 = vst.msk [vmem:[%s2590_s4 + $0x58] sm:$0xff] %vm245_vm1, %v1434_v39  ;;  %v1352_v30 = vpop.permute.xlu0 %1351 }
 0x1b0   : > { %v1435_v29 = vmul.f32 %v1352_v30, %v2475_v61  ;;  %v1354_v41 = vpop.permute.xlu1 %1353 }
 0x1b1   : > { %v1436_v43 = vmul.f32 %v1354_v41, %v2472_v59 }
 0x1b2   : > { %1467 = vst.msk [vmem:[%s2590_s4 + $0x60] sm:$0xff] %vm245_vm1, %v1435_v29 }
 0x1b3   : > { %1468 = vst.msk [vmem:[%s2590_s4 + $0x68] sm:$0xff] %vm245_vm1, %v1436_v43  ;;  %v1356_v42 = vpop.permute.xlu0 %1355 }
 0x1b4   : > { %v1437_v40 = vmul.f32 %v1356_v42, %v2486_v50  ;;  %v1358_v44 = vpop.permute.xlu1 %1357 }
 0x1b5   : > { %v1438_v46 = vmul.f32 %v1358_v44, %v2482_v7 }
 0x1b6   : > { %1469 = vst.msk [vmem:[%s2590_s4 + $0x70] sm:$0xff] %vm245_vm1, %v1437_v40 }
 0x1b7   : > { %1470 = vst.msk [vmem:[%s2590_s4 + $0x78] sm:$0xff] %vm245_vm1, %v1438_v46 }
 0x1ba   : > { %v1362_v61 = vpop.permute.xlu1 %1361 }
 0x1bb   : > { %v1440_v59 = vmul.f32 %v1362_v61, %v2493_v35 }
 0x1bc   : > { %v1360_v53 = vpop.permute.xlu0 %1359 }
 0x1bd   : > { %1472 = vst.msk [vmem:[%s2590_s4 + $0x88] sm:$0xff] %vm245_vm1, %v1440_v59  ;;  %v1439_v47 = vmul.f32 %v1360_v53, %v2497_v37 }
 0x1be   : > { %v1366_v55 = vpop.permute.xlu1 %1365 }
 0x1bf   : > { %1471 = vst.msk [vmem:[%s2590_s4 + $0x80] sm:$0xff] %vm245_vm1, %v1439_v47  ;;  %v1442_v7 = vmul.f32 %v1366_v55, %v2503_v62 }
 0x1c0   : > { %v1364_v50 = vpop.permute.xlu0 %1363 }
 0x1c1   : > { %1474 = vst.msk [vmem:[%s2590_s4 + $0x98] sm:$0xff] %vm245_vm1, %v1442_v7  ;;  %v1441_v60 = vmul.f32 %v1364_v50, %v2507_v48 }
 0x1c2   : > { %v1370_v63 = vpop.permute.xlu1 %1369 }
 0x1c3   : > { %1473 = vst.msk [vmem:[%s2590_s4 + $0x90] sm:$0xff] %vm245_vm1, %v1441_v60  ;;  %v1444_v35 = vmul.f32 %v1370_v63, %v2513_v54 }
 0x1c4   : > { %v1368_v3 = vpop.permute.xlu0 %1367 }
 0x1c5   : > { %1476 = vst.msk [vmem:[%s2590_s4 + $0xa8] sm:$0xff] %vm245_vm1, %v1444_v35  ;;  %v1443_v37 = vmul.f32 %v1368_v3, %v2517_v19 }
 0x1c6   : > { %v1374_v4 = vpop.permute.xlu1 %1373 }
 0x1c7   : > { %1475 = vst.msk [vmem:[%s2590_s4 + $0xa0] sm:$0xff] %vm245_vm1, %v1443_v37  ;;  %v1446_v62 = vmul.f32 %v1374_v4, %v2523_v33 }
 0x1c8   : > { %v1372_v48 = vpop.permute.xlu0 %1371 }
 0x1c9   : > { %1478 = vst.msk [vmem:[%s2590_s4 + $0xb8] sm:$0xff] %vm245_vm1, %v1446_v62  ;;  %v1445_v49 = vmul.f32 %v1372_v48, %v2527_v36 }
 0x1ca   : > { %v1378_v5 = vpop.permute.xlu1 %1377 }
 0x1cb   : > { %1477 = vst.msk [vmem:[%s2590_s4 + $0xb0] sm:$0xff] %vm245_vm1, %v1445_v49  ;;  %v1448_v54 = vmul.f32 %v1378_v5, %v2533_v56 }
 0x1cc   : > { %v1376_v19 = vpop.permute.xlu0 %1375 }
 0x1cd   : > { %1480 = vst.msk [vmem:[%s2590_s4 + $0xc8] sm:$0xff] %vm245_vm1, %v1448_v54  ;;  %v1447_v6 = vmul.f32 %v1376_v19, %v2537_v0 }
 0x1ce   : > { %v1382_v11 = vpop.permute.xlu1 %1381 }
 0x1cf   : > { %1479 = vst.msk [vmem:[%s2590_s4 + $0xc0] sm:$0xff] %vm245_vm1, %v1447_v6  ;;  %v1450_v33 = vmul.f32 %v1382_v11, %v2543_v21 }
 0x1d0   : > { %v1380_v36 = vpop.permute.xlu0 %1379 }
 0x1d1   : > { %1482 = vst.msk [vmem:[%s2590_s4 + $0xd8] sm:$0xff] %vm245_vm1, %v1450_v33  ;;  %v1449_v13 = vmul.f32 %v1380_v36, %v2547_v24 }
 0x1d3   : > { %1481 = vst.msk [vmem:[%s2590_s4 + $0xd0] sm:$0xff] %vm245_vm1, %v1449_v13  ;;  %v1386_v56 = vpop.permute.xlu1 %1385 }
 0x1d4   : > { %v1452_v14 = vmul.f32 %v1386_v56, %v2553_v45  ;;  %v1384_v15 = vpop.permute.xlu0 %1383 }
 0x1d5   : > { %v1451_v0 = vmul.f32 %v1384_v15, %v2557_v51 }
 0x1d6   : > { %1484 = vst.msk [vmem:[%s2590_s4 + $0xe8] sm:$0xff] %vm245_vm1, %v1452_v14 }
 0x1d7   : > { %1483 = vst.msk [vmem:[%s2590_s4 + $0xe0] sm:$0xff] %vm245_vm1, %v1451_v0  ;;  %v1390_v16 = vpop.permute.xlu1 %1389 }
 0x1d8   : > { %v1454_v21 = vmul.f32 %v1390_v16, %v2562_v8  ;;  %v1388_v20 = vpop.permute.xlu0 %1387 }
 0x1d9   : > { %v1453_v22 = vmul.f32 %v1388_v20, %v2565_v12 }
 0x1da   : > { %1486 = vst.msk [vmem:[%s2590_s4 + $0xf8] sm:$0xff] %vm245_vm1, %v1454_v21 }
 0x1db   : > { %1485 = vst.msk [vmem:[%s2590_s4 + $0xf0] sm:$0xff] %vm245_vm1, %v1453_v22 }
 0x1dc PF: > { %s13_s14 = sadd.s32 1, %s2208_s14   ;;  %s2701_s12 = smov %s2204_s13 }
 0x1dd   : > { %p10_p5 = scmp.ge.s32.totalorder %s13_s14, 4   ;;  %s2702_s13 = smov %s2704_s15 }
 0x1df   :  { %12 = sbr.rel (!%p10_p5) target bundleno = 2 (0x2), region = 64 }

</bundles_post_ra>
